<compile_context>
chip_gen: v7x
topology: tpu7x:2x2x1
jax: 0.10.0
libtpu: 0.0.40
codegen_flags: <defaults>
</compile_context>

<pallas_src>
import jax
import jax.numpy as jnp
import numpy as np
from jax.experimental import pallas as pl
from jax.experimental.pallas import tpu as pltpu


def _round_up(x, m):
    return (x + m - 1) // m * m


def _fused_policy_kernel(z_ref, wb_ref, bb_ref, out_ref):
    # z_ref  : [tn, cfc*E]          one row per (b, layer, i); cols pack (j, e)
    # wb_ref : [cfc*E, cfs*cfc*M]   block-diag fused hypernet weight (grid-invariant)
    # bb_ref : [1,     cfs*cfc*M]   fused bias (grid-invariant)
    # out_ref: [tn,    cfs*cfc*M]   columns already ordered (ci, j, cj, kh, kw)
    out_ref[...] = (
        jnp.dot(z_ref[...], wb_ref[...], preferred_element_type=jnp.float32)
        + bb_ref[...]
    )


def generate_kernels(z_groups, w_ke, b_ke, w_lg, b_lg, *, cfc, cfs, E,
                     max_tile=4096):
    """Fused hypernetwork weight generation.

    z_groups: [R, cfc*E] with R = B*2*cfc, row r = (b, layer, i), cols (j, e).
    Returns:  [R, cfs*cfc*M] (M = cfs*K*K) with columns ordered
              (ci, j, cj, kh, kw) so the caller only needs contiguous reshapes.
    """
    R, CE_in = z_groups.shape
    assert CE_in == cfc * E
    M = w_lg.shape[1]                 # cfs * K * K
    CM = cfs * cfc * M                # output columns per row group

    hp = jax.lax.Precision.HIGHEST
    # One-time fusion of the two hypernetwork matmuls (tiny: E x cfs*E x M).
    w_fused = jnp.einsum("ace,em->acm", w_ke.reshape(E, cfs, E), w_lg,
                         precision=hp)                              # [E, cfs, M]
    b_fused = (jnp.dot(b_ke.reshape(cfs, E), w_lg, precision=hp)
               + b_lg[None, :])                                     # [cfs, M]

    # Block-diagonal expansion over the j (column-position) axis:
    #   W_big[j*E+e, ci*cfc*M + j'*M + m] = w_fused[e, ci, m] * (j == j')
    eye = jnp.eye(cfc, dtype=jnp.float32)
    w_big = (eye[:, None, None, :, None]            # [j, 1,  1,   j', 1]
             * w_fused[None, :, :, None, :]         # [1, e,  ci,  1,  m]
             ).reshape(cfc * E, CM)                 # rows (j,e), cols (ci,j',m)
    b_big = jnp.broadcast_to(b_fused[:, None, :], (cfs, cfc, M)).reshape(1, CM)

    # ---------------- row-tile selection (HBM / step-overhead bound) --------
    r_pad = _round_up(R, 8)
    # VMEM cap: z + out tiles, double-buffered, f32; conservative vs v5e 16MiB.
    per_row_bytes = (CE_in + CM) * 4 * 2
    tn_vmem = max(8, ((12 << 20) // per_row_bytes) // 8 * 8)
    # Keep >= ~4 grid steps when R is large so v7x megacore can shard the axis.
    tn_steps = _round_up(-(-r_pad // 4), 8)
    tn = max(8, min(max_tile, tn_vmem, tn_steps))
    r_pad = _round_up(r_pad, tn)
    if r_pad != R:
        z_groups = jnp.pad(z_groups, ((0, r_pad - R), (0, 0)))

    out = pl.pallas_call(
        _fused_policy_kernel,
        out_shape=jax.ShapeDtypeStruct((r_pad, CM), jnp.float32),
        grid_spec=pltpu.PrefetchScalarGridSpec(
            num_scalar_prefetch=0,
            grid=(r_pad // tn,),
            in_specs=[
                pl.BlockSpec((tn, CE_in), lambda i: (i, 0)),   # z row groups (tiled)
                pl.BlockSpec((CE_in, CM), lambda i: (0, 0)),   # fused weight (invariant)
                pl.BlockSpec((1, CM), lambda i: (0, 0)),       # fused bias   (invariant)
            ],
            out_specs=pl.BlockSpec((tn, CM), lambda i: (i, 0)),
        ),
        compiler_params=pltpu.CompilerParams(
            dimension_semantics=("parallel",)),
    )(z_groups, w_big, b_big)

    if r_pad != R:
        out = out[:R]
    return out


# TODO(synk): StateUpdateGRU is not defined in the provided source; this is a
# deterministic stand-in producing the state tensor [B, 2, cfc, cfc, E] that
# Policy.forward reshapes into z_list for each of the two generated layers.
def state_update_stub(obs, w_s, b_s, cfc, E):
    B = obs.shape[0]
    s = jnp.tanh(obs @ w_s + b_s)
    return s.reshape(B, 2, cfc, cfc, E)


def policy_forward(obs, w_s, b_s, w_ke, b_ke, w_lg, b_lg, *, cfc, cfs, E, K):
    B = obs.shape[0]
    states = state_update_stub(obs, w_s, b_s, cfc, E)          # [B, 2, cfc, cfc, E]
    # Group rows by (b, layer, i); inner axis packs (j, e).  Contiguous -> free.
    z_groups = states.reshape(B * 2 * cfc, cfc * E)

    out = generate_kernels(z_groups, w_ke, b_ke, w_lg, b_lg,
                           cfc=cfc, cfs=cfs, E=E)              # [B*2*cfc, cfs*cfc*M]

    # Kernel already emits the final column order (ci, j, cj, kh, kw):
    # only contiguous reshapes remain (no transpose -> no extra HBM pass).
    w = out.reshape(B, 2, cfc, cfs, cfc, cfs, K, K).reshape(
        B, 2, cfc * cfs, cfc * cfs, K, K)
    return w[:, 0], w[:, 1]


# ------------------------- pure-JAX reference ------------------------------ #
def _parse_kernel_ref(z, w_ke, b_ke, w_lg, b_lg, cfs, E, K):
    Bz = z.shape[0]
    h_in = (z @ w_ke + b_ke).reshape(Bz, cfs, E)
    h_final = jnp.matmul(h_in, w_lg) + b_lg
    return h_final.reshape(Bz, cfs, cfs, K, K)


def _compute_layer_ref(z_list, w_ke, b_ke, w_lg, b_lg, cfc, cfs, E, K):
    ww = []
    for i in range(cfc):
        ws = []
        for j in range(cfc):
            ws.append(_parse_kernel_ref(z_list[:, i * cfc + j, :],
                                        w_ke, b_ke, w_lg, b_lg, cfs, E, K))
        ww.append(jnp.concatenate(ws, axis=2))
    return jnp.concatenate(ww, axis=1)


def _policy_forward_ref(obs, w_s, b_s, w_ke, b_ke, w_lg, b_lg, *, cfc, cfs, E, K):
    B = obs.shape[0]
    states = state_update_stub(obs, w_s, b_s, cfc, E)
    z1 = states[:, 0].reshape(B, cfc * cfc, E)
    z2 = states[:, 1].reshape(B, cfc * cfc, E)
    w1 = _compute_layer_ref(z1, w_ke, b_ke, w_lg, b_lg, cfc, cfs, E, K)
    w2 = _compute_layer_ref(z2, w_ke, b_ke, w_lg, b_lg, cfc, cfs, E, K)
    return w1, w2


if __name__ == "__main__":
    # small config consistent with the module's __init__
    B = 2                    # batch
    channels = 8
    cfc = 2                  # channels_factor_count
    cfs = channels // cfc    # channels_factor_size = 4
    E = 32                   # embedding_size (embedding_factor_count = 1)
    K = 3                    # kernel_size
    obs_dim = 32
    CE = cfs * E             # 128
    M = cfs * K * K          # 36

    key = jax.random.PRNGKey(0)
    k1, k2, k3, k4, k5, k6, k7 = jax.random.split(key, 7)
    # torch.fmod(torch.randn(...), 2) analogue
    w_lg = jnp.fmod(jax.random.normal(k1, (E, M), jnp.float32), 2.0)
    b_lg = jnp.fmod(jax.random.normal(k2, (M,), jnp.float32), 2.0)
    w_ke = jnp.fmod(jax.random.normal(k3, (E, CE), jnp.float32), 2.0)
    b_ke = jnp.fmod(jax.random.normal(k4, (CE,), jnp.float32), 2.0)
    # stand-in state-update parameters
    w_s = 0.1 * jnp.fmod(jax.random.normal(k5, (obs_dim, 2 * cfc * cfc * E), jnp.float32), 2.0)
    b_s = 0.1 * jnp.fmod(jax.random.normal(k6, (2 * cfc * cfc * E,), jnp.float32), 2.0)

    obs = jax.random.normal(k7, (B, obs_dim), jnp.float32)

    w1, w2 = policy_forward(obs, w_s, b_s, w_ke, b_ke, w_lg, b_lg,
                            cfc=cfc, cfs=cfs, E=E, K=K)
    jax.block_until_ready((w1, w2))

    r1, r2 = _policy_forward_ref(obs, w_s, b_s, w_ke, b_ke, w_lg, b_lg,
                                 cfc=cfc, cfs=cfs, E=E, K=K)
    assert w1.shape == (B, channels, channels, K, K)
    assert w2.shape == (B, channels, channels, K, K)
    # Fused-weight form changes FP32 accumulation order slightly vs. the
    # two-stage reference; tolerance reflects that (still bug-level-tight).
    np.testing.assert_allclose(np.asarray(w1), np.asarray(r1), rtol=1e-4, atol=1e-4)
    np.testing.assert_allclose(np.asarray(w2), np.asarray(r2), rtol=1e-4, atol=1e-4)

    print("KERNEL_OK")
</pallas_src>

<mosaic_0001>
module attributes {stable_mosaic.version = 11 : i64} {
  func.func @_fused_policy_kernel(%arg0: i32, %arg1: memref<8x64xf32, #tpu.memory_space<vmem>>, %arg2: memref<64x288xf32, #tpu.memory_space<vmem>>, %arg3: memref<1x288xf32, #tpu.memory_space<vmem>>, %arg4: memref<8x288xf32, #tpu.memory_space<vmem>>) attributes {dimension_semantics = [#tpu.dimension_semantics<parallel>], iteration_bounds = array<i64: 1>, scalar_prefetch = 0 : i64, scratch_operands = 0 : i64, tpu.core_type = #tpu.core_type<tc>, window_params = [{transform_indices = @transform_0, window_bounds = array<i64: 8, 64>}, {pipeline_mode = #tpu.pipeline_mode<synchronous>, transform_indices = @transform_1, window_bounds = array<i64: 64, 288>}, {pipeline_mode = #tpu.pipeline_mode<synchronous>, transform_indices = @transform_2, window_bounds = array<i64: 1, 288>}, {transform_indices = @transform_3, window_bounds = array<i64: 8, 288>}]} {
    %c0 = arith.constant 0 : index
    %c0_0 = arith.constant 0 : index
    %0 = vector.load %arg1[%c0, %c0_0] : memref<8x64xf32, #tpu.memory_space<vmem>>, vector<8x64xf32>
    %c0_1 = arith.constant 0 : index
    %c0_2 = arith.constant 0 : index
    %1 = vector.load %arg2[%c0_1, %c0_2] : memref<64x288xf32, #tpu.memory_space<vmem>>, vector<64x288xf32>
    %cst = arith.constant dense<0.000000e+00> : vector<8x288xf32>
    %2 = tpu.matmul %0, %1, %cst {dimension_numbers = #tpu.dot_dimension_numbers<[1], [0], [0], [1], [0, 0, 1, 1], [], []>} : vector<8x64xf32>, vector<64x288xf32>, vector<8x288xf32> -> vector<8x288xf32>
    %c0_3 = arith.constant 0 : index
    %c0_4 = arith.constant 0 : index
    %3 = vector.load %arg3[%c0_3, %c0_4] : memref<1x288xf32, #tpu.memory_space<vmem>>, vector<1x288xf32>
    %4 = vector.broadcast %3 : vector<1x288xf32> to vector<8x288xf32>
    %5 = arith.addf %2, %4 : vector<8x288xf32>
    %c0_5 = arith.constant 0 : index
    %c0_6 = arith.constant 0 : index
    %6 = vector.load %arg4[%c0_5, %c0_6] : memref<8x288xf32, #tpu.memory_space<vmem>>, vector<8x288xf32>
    tpu.vector_store %arg4[%c0_5, %c0_6], %5 {strides = array<i32>} : memref<8x288xf32, #tpu.memory_space<vmem>>, vector<8x288xf32>,
    return
  }
  func.func @transform_0(%arg0: i32) -> (i32, i32) {
    %c0_i32 = arith.constant 0 : i32
    %c0_i32_0 = arith.constant 0 : i32
    return %arg0, %c0_i32 : i32, i32
  }
  func.func @transform_1(%arg0: i32) -> (i32, i32) {
    %c0_i32 = arith.constant 0 : i32
    %c0_i32_0 = arith.constant 0 : i32
    %c0_i32_1 = arith.constant 0 : i32
    return %c0_i32, %c0_i32_0 : i32, i32
  }
  func.func @transform_2(%arg0: i32) -> (i32, i32) {
    %c0_i32 = arith.constant 0 : i32
    %c0_i32_0 = arith.constant 0 : i32
    %c0_i32_1 = arith.constant 0 : i32
    return %c0_i32, %c0_i32_0 : i32, i32
  }
  func.func @transform_3(%arg0: i32) -> (i32, i32) {
    %c0_i32 = arith.constant 0 : i32
    %c0_i32_0 = arith.constant 0 : i32
    return %arg0, %c0_i32 : i32, i32
  }
}

</mosaic_0001>

<bundles_post_ra>
// kernel: tpu_custom_call.1
= control target key start
LH: loop header
LB: loop body
LE: loop exit
PB: predicated region body
PF: predicated region fallthrough
CT: control target
= control target key end

     0   :  { %8 = vsyncpa [#allocation3], 0  ;;  %s460_s0 = inlined_call_operand.hbm [shape: f32[8,64], index: 0, kind: input, shape index: {}]   ;;  %s461_s1 = inlined_call_operand.hbm [shape: f32[64,288], index: 1, kind: input, shape index: {}]   ;;  %s462_s2 = inlined_call_operand.vmem [shape: f32[1,288], index: 2, kind: input, shape index: {}]   ;;  %s463_s3 = inlined_call_operand.hbm [shape: f32[8,288], index: 3, kind: output, shape index: {}]  }
   0x1   :  { %9 = vsyncpa [#allocation6], 0 }
   0x2   :  { %10 = vsyncpa [#allocation4], 0  ;;  %s386_s12 = smov [#allocation2]   ;;  %s387_s14 = smov [#allocation5]  }
   0x3   :  { %s17_s13 = sshll.u32 %s386_s12, 4  ;;  %s26_s15 = sshll.u32 %s387_s14, 4  ;;  %s18_s13 = int_to_ptr.vmem [resolvable:$true] %s17_s13  ;;  %s414_s15 = int_to_ptr.vmem [resolvable:$true] %s26_s15 }
   0x4   :  { %s314_s18 = scalar_lea.hbm %s460_s0, 128 }
   0x5   :  { %p315_p0 = scmp.ne.s32.totalorder %s460_s0, %s314_s18  ;;  %p318_p1 = scmp.lt.u32.totalorder %s314_s18, %s460_s0 }
   0x7   :  { %p320_p2 = pnand %p318_p1, %p315_p0 }
   0x9   :  { %323 = shalt.err (!%p320_p2)
}
   0xa   :  { %s324_s23 = scalar_lea.vmem %s18_s13, 128  ;;  %p329_p4 = scmp.lt.s32.totalorder %s18_s13, %s18_s13 }
   0xb   :  { %p325_p3 = scmp.ne.s32.totalorder %s18_s13, %s324_s23  ;;  %p330_p5 = scmp.lt.s32.totalorder %s324_s23, %s324_s23 }
   0xd   :  { %p331_p6 = por %p330_p5, %p329_p4 }
   0xf   :  { %p332_p7 = pnand %p331_p6, %p325_p3 }
  0x11   :  { %335 = shalt.err (!%p332_p7)
}
  0x12   :  { %20 = dma.hbm_to_vmem [thread:$0]  %s460_s0, 128, %s18_s13, [#allocation3]  }
  0x13   :  { %s336_s28 = scalar_lea.hbm %s461_s1, 3072 }
  0x14   :  { %p337_p8 = scmp.ne.s32.totalorder %s461_s1, %s336_s28  ;;  %p340_p9 = scmp.lt.u32.totalorder %s336_s28, %s461_s1 }
  0x16   :  { %p342_p10 = pnand %p340_p9, %p337_p8 }
  0x18   :  { %345 = shalt.err (!%p342_p10)
}
  0x19   :  { %s346_s6 = scalar_lea.vmem %s414_s15, 3072  ;;  %p351_p12 = scmp.lt.s32.totalorder %s414_s15, %s414_s15 }
  0x1a   :  { %p347_p11 = scmp.ne.s32.totalorder %s414_s15, %s346_s6  ;;  %p352_p13 = scmp.lt.s32.totalorder %s346_s6, %s346_s6 }
  0x1c   :  { %p353_p0 = por %p352_p13, %p351_p12 }
  0x1e   :  { %p354_p1 = pnand %p353_p0, %p347_p11 }
  0x20   :  { %357 = shalt.err (!%p354_p1)
}
  0x21   :  { %s388_s0 = smov 384   ;;  %s389_s7 = smov 24  }
  0x22   :  { %32 = dma.hbm_to_vmem [thread:$0]  %s461_s1, 3072, %s414_s15, [#allocation6], %s388_s0, %s388_s0, %s389_s7  }
  0x23   :  { %380 = dma.done.wait [#allocation3], 128  }
  0x24   :  { %381 = vsyncadd [#allocation3], 4294967168 }
  0x25   :  { %382 = dma.done.wait [#allocation6], 3072  }
  0x26   :  { %383 = vsyncadd [#allocation6], 4294964224  ;;  %v390_v0 = vmov 0.0|0.0   ;;  %v391_v1 = vmov 0.0   ;;  %vm392_vm0 = vmmov 0   ;;  %v43_v2 = vld [vmem:[#allocation5 + $0x8] sm:$0xff]  ;;  %v68_v39 = vlaneseq }
  0x27   :  { %294 = vmatprep.subr.bf16.mxu1 %v390_v0  ;;  %151 = vmatprep.mubr.f32.mxu0 %v391_v1  ;;  %v46_v3 = vld [vmem:[#allocation5 + $0x20] sm:$0xff]  ;;  %v45_v6 = vld [vmem:[#allocation5 + $0x18] sm:$0xff]  ;;  %v44_v7 = vld [vmem:[#allocation5 + $0x10] sm:$0xff]  ;;  %vm83_vm1 = vcmask 523264   ;;  %s393_s11 = smov [#allocation7]   ;;  %vm230_vm2 = vcmask 261120  }
  0x28   :  { %275 = vmatprep.mubr.msk.f32.mxu1 %vm392_vm0, %v391_v1  ;;  %v42_v4 = vld [vmem:[#allocation5] sm:$0xff]  ;;  %v278_v5 = vpack.c.bf16 %v46_v3, %v43_v2  ;;  %v47_v8 = vld [vmem:[#allocation5 + $0x28] sm:$0xff]  ;;  %v49_v11 = vld [vmem:[#allocation5 + $0x38] sm:$0xff]  ;;  %v69_v40 = vshrl.u32 %v68_v39, 7  ;;  %s238_s12 = sshll.u32 %s393_s11, 4  ;;  %s239_s12 = int_to_ptr.vmem [resolvable:$true] %s238_s12 }
  0x29   :  { %v280_v9 = vpack.c.bf16 %v45_v6, %v42_v4  ;;  %v295_v10 = vpack.c.bf16 %v47_v8, %v44_v7  ;;  %v52_v12 = vld [vmem:[#allocation5 + $0x50] sm:$0xff]  ;;  %v51_v15 = vld [vmem:[#allocation5 + $0x48] sm:$0xff]  ;;  %v50_v16 = vld [vmem:[#allocation5 + $0x40] sm:$0xff]  ;;  %s358_s13 = scalar_lea.vmem %s239_s12, 384  ;;  %p363_p3 = scmp.lt.s32.totalorder %s239_s12, %s239_s12 }
  0x2a   :  { %v48_v13 = vld [vmem:[#allocation5 + $0x30] sm:$0xff]  ;;  %279 = vmatprep.subr.bf16.mxu0 %v278_v5  ;;  %v282_v14 = vpack.c.bf16 %v52_v12, %v49_v11  ;;  %v53_v17 = vld [vmem:[#allocation5 + $0x58] sm:$0xff]  ;;  %v55_v20 = vld [vmem:[#allocation5 + $0x68] sm:$0xff]  ;;  %v70_v41 = vsub.s32 0, %v69_v40  ;;  %v78_v42 = vsub.s32 2, %v69_v40  ;;  %v74_v44 = vsub.s32 1, %v69_v40  ;;  %p359_p2 = scmp.ne.s32.totalorder %s239_s12, %s358_s13  ;;  %p364_p4 = scmp.lt.s32.totalorder %s358_s13, %s358_s13 }
  0x2b   :  { %281 = vmatpush1.bf16.msra.mxu0 %v280_v9  ;;  %296 = vmatpush3.bf16.msra.mxu1 %v295_v10  ;;  %v284_v18 = vpack.c.bf16 %v51_v15, %v48_v13  ;;  %v298_v19 = vpack.c.bf16 %v53_v17, %v50_v16  ;;  %v58_v21 = vld [vmem:[#allocation5 + $0x80] sm:$0xff]  ;;  %v57_v24 = vld [vmem:[#allocation5 + $0x78] sm:$0xff]  ;;  %v56_v25 = vld [vmem:[#allocation5 + $0x70] sm:$0xff] }
  0x2c   :  { %v54_v22 = vld [vmem:[#allocation5 + $0x60] sm:$0xff]  ;;  %283 = vmatprep.subr.bf16.mxu0 %v282_v14  ;;  %297 = vmatprep.subr.bf16.mxu1 %v390_v0  ;;  %v286_v23 = vpack.c.bf16 %v58_v21, %v55_v20  ;;  %v59_v26 = vld [vmem:[#allocation5 + $0x88] sm:$0xff]  ;;  %v61_v27 = vld [vmem:[#allocation5 + $0x98] sm:$0xff]  ;;  %p365_p5 = por %p364_p4, %p363_p3 }
  0x2d   :  { %v64_v28 = vld [vmem:[#allocation5 + $0xb0] sm:$0xff]  ;;  %v288_v29 = vpack.c.bf16 %v57_v24, %v54_v22  ;;  %v301_v30 = vpack.c.bf16 %v59_v26, %v56_v25  ;;  %v63_v33 = vld [vmem:[#allocation5 + $0xa8] sm:$0xff]  ;;  %v62_v34 = vld [vmem:[#allocation5 + $0xa0] sm:$0xff] }
  0x2e   :  { %v60_v31 = vld [vmem:[#allocation5 + $0x90] sm:$0xff]  ;;  %v290_v32 = vpack.c.bf16 %v64_v28, %v61_v27  ;;  %v65_v35 = vld [vmem:[#allocation5 + $0xb8] sm:$0xff]  ;;  %p366_p6 = pnand %p365_p5, %p359_p2 }
  0x2f   :  { %285 = vmatpush1.bf16.msra.mxu0 %v284_v18  ;;  %299 = vmatpush3.bf16.msra.mxu1 %v298_v19  ;;  %v292_v36 = vpack.c.bf16 %v63_v33, %v60_v31  ;;  %v304_v37 = vpack.c.bf16 %v65_v35, %v62_v34  ;;  %v41_v38 = vld [vmem:[#allocation2] sm:$0xff] }
  0x30   :  { %287 = vmatprep.subr.bf16.mxu0 %v286_v23  ;;  %300 = vmatprep.subr.bf16.mxu1 %v390_v0  ;;  %v66_v43 = vld [vmem:[%s462_s2] sm:$0x7] }
  0x31   :  { %v71_v45 = vrot.slane %v66_v43, %v70_v41  ;;  %v79_v46 = vrot.slane %v66_v43, %v78_v42  ;;  %v75_v47 = vrot.slane %v66_v43, %v74_v44 }
  0x33   :  { %289 = vmatpush1.bf16.msra.mxu0 %v288_v29  ;;  %302 = vmatpush3.bf16.msra.mxu1 %v301_v30 }
  0x34   :  { %291 = vmatprep.subr.bf16.mxu0 %v290_v32  ;;  %303 = vmatprep.subr.bf16.mxu1 %v390_v0 }
  0x37   :  { %293 = vmatpush1.bf16.msra.mxu0 %v292_v36  ;;  %305 = vmatpush3.bf16.msra.mxu1 %v304_v37 }
  0x3a   :  { %248 = vmatmul.mubr.msk.f32.vlgmr.msra.gmra.mrb[0].mxu0 %vm83_vm1, %v41_v38  ;;  %276 = vmatmul.mubr.msk.f32.vlgmr.msra.gmra.mrb[0].mxu1 %vm83_vm1, %v41_v38 }
 0x10d   :  { %v153_v48 = vpop.f32.mrb[0].mxu0  ;;  %v224_v49 = vpop.f32.mrb[0].mxu1 }
 0x10e   :  { %v154_v50 = vadd.f32 %v153_v48, %v71_v45  ;;  %v225_v51 = vadd.f32 %v224_v49, %v79_v46  ;;  %v155_v52 = vpop.f32.mrb[1].mxu0  ;;  %v277_v53 = vpop.f32.mrb[1].mxu1 }
 0x10f   :  { %v156_v54 = vadd.f32 %v155_v52, %v75_v47 }
 0x110   :  { %228 = vst [vmem:[#allocation7] sm:$0xff] %v154_v50  ;;  %231 = vst.msk [vmem:[#allocation7 + $0x10] sm:$0xff] %vm230_vm2, %v225_v51 }
 0x111   :  { %229 = vst [vmem:[#allocation7 + $0x8] sm:$0xff] %v156_v54 }
 0x112   :  { %369 = shalt.err (!%p366_p6)
}
 0x113   :  { %s370_s15 = scalar_lea.hbm %s463_s3, 384 }
 0x114   :  { %p371_p7 = scmp.ne.s32.totalorder %s463_s3, %s370_s15  ;;  %p374_p8 = scmp.lt.u32.totalorder %s370_s15, %s463_s3 }
 0x116   :  { %p376_p9 = pnand %p374_p8, %p371_p7 }
 0x118   :  { %379 = shalt.err (!%p376_p9)
}
 0x119   :  { %241 = dma.vmem_to_hbm [thread:$0]  %s239_s12, 384, %s463_s3, [#allocation4]  }
 0x11a   :  { %384 = dma.done.wait [#allocation4], 384  }
 0x11b   :  { %385 = vsyncadd [#allocation4], 4294966912 }
 0x11c   :  { %245 = vsyncpa [#allocation3], 1 }
 0x11d   :  { %246 = vsyncpa [#allocation6], 1 }
 0x11e   :  { %247 = vsyncpa [#allocation4], 1 }

</bundles_post_ra>
